<compile_context>
chip_gen: v7x
topology: tpu7x:2x2x1
jax: 0.10.0
libtpu: 0.0.40
codegen_flags: <defaults>
</compile_context>

<pallas_src>
import functools

import jax
import jax.numpy as jnp
from jax.experimental import pallas as pl
from jax.experimental.pallas import tpu as pltpu


def _layernorm_kernel(alpha_ref, bias_ref, x_ref, o_ref, *, eps, inv_n, inv_nm1):
    # alpha_ref / bias_ref: SMEM scalars of shape (1,)
    # x_ref / o_ref: VMEM tiles of shape (row_block, hidden)
    x = x_ref[...].astype(jnp.float32)
    # mean = sum(x) * (1/n)   (constant folded, no runtime divide)
    mean = jnp.sum(x, axis=-1, keepdims=True) * inv_n
    diff = x - mean
    # torch.std uses Bessel's correction (divide by N-1), folded into inv_nm1
    var = jnp.sum(diff * diff, axis=-1, keepdims=True) * inv_nm1
    std = jnp.sqrt(var)
    # Per-row scale: alpha / (std + eps).  Exact divide on a (rb, 1) column ->
    # negligible cost, and exact vs torch (no approximate reciprocal).
    scale = alpha_ref[0] / (std + eps)
    # Single fused FMA pass over the tile: alpha*(x-mean)/(std+eps) + bias
    o_ref[...] = (diff * scale + bias_ref[0]).astype(o_ref.dtype)


def _vmem_limit_bytes():
    """Per-generation VMEM the kernel may use (<= physical, with headroom)."""
    phys = 64 << 20  # conservative default (v7x per-TensorCore VMEM)
    try:
        info = pltpu.get_tpu_info()
        phys = int(getattr(info, "vmem_capacity_bytes", phys))
    except Exception:
        pass
    # Leave 25% compiler headroom; 96 MiB is plenty past the roofline knee.
    return min(int(phys * 0.75), 96 << 20)


def _pick_row_block(rows, hidden, dtype, vmem_limit):
    """Largest sublane-aligned row block whose buffers fit the VMEM budget."""
    dtype_bytes = jnp.dtype(dtype).itemsize
    # sublane packing: f32 -> 8 rows/vreg, bf16 -> 16, int8/fp8 -> 32
    pack = max(8, 32 // dtype_bytes)
    row_bytes = hidden * dtype_bytes
    # Per-row VMEM cost: double-buffered input + output tiles at native dtype,
    # plus ~2 f32-tile compiler temporaries (x upcast / diff), not double-buffered.
    per_row = 2 * 2 * row_bytes + 2 * hidden * 4
    usable = max(vmem_limit - (4 << 20), per_row * pack)  # keep 4 MiB headroom
    rb = max(pack, usable // per_row)
    rb = (rb // pack) * pack

    if rows <= pack:
        # Single block equal to the full row extent (satisfies the block-shape rule).
        return rows
    rb = min(rb, ((rows + pack - 1) // pack) * pack)

    # Expose a few grid steps so double-buffering (and v7x's two TensorCores)
    # can overlap DMA with compute, but never shrink tiles below ~1 MiB:
    # the ~0.35 us per-grid-step overhead dominates small tiles.
    min_tile_bytes = 1 << 20
    target_steps = 8
    while rb > pack:
        half = max(pack, ((rb // 2) // pack) * pack)
        if -(-rows // rb) >= target_steps or half * row_bytes < min_tile_bytes:
            break
        rb = half
    return rb


def layer_normalization(x, alpha=None, bias=None, *, eps=1e-5, affine=True,
                        row_block=None):
    """x: (..., hidden). alpha, bias: shape (1,) scalars (as in the torch module)."""
    orig_shape = x.shape
    hidden = orig_shape[-1]
    rows = 1
    for d in orig_shape[:-1]:
        rows *= d
    x2 = x.reshape(rows, hidden)  # row-major collapse: no data movement

    if not affine or alpha is None or bias is None:
        alpha = jnp.ones((1,), jnp.float32)
        bias = jnp.zeros((1,), jnp.float32)

    vmem_limit = _vmem_limit_bytes()
    if row_block is None:
        row_block = _pick_row_block(rows, hidden, x.dtype, vmem_limit)

    inv_n = 1.0 / float(hidden)
    # hidden==1: torch.std gives NaN; we return `bias` instead (documented divergence).
    inv_nm1 = 1.0 / float(hidden - 1) if hidden > 1 else 0.0

    kernel = functools.partial(_layernorm_kernel, eps=float(eps),
                               inv_n=inv_n, inv_nm1=inv_nm1)

    grid = (pl.cdiv(rows, row_block),)  # partial last block is clipped by Pallas
    out2 = pl.pallas_call(
        kernel,
        out_shape=jax.ShapeDtypeStruct((rows, hidden), x.dtype),
        grid=grid,
        in_specs=[
            pl.BlockSpec(memory_space=pltpu.MemorySpace.SMEM),  # alpha (1,)
            pl.BlockSpec(memory_space=pltpu.MemorySpace.SMEM),  # bias  (1,)
            pl.BlockSpec((row_block, hidden), lambda i: (i, 0)),
        ],
        out_specs=pl.BlockSpec((row_block, hidden), lambda i: (i, 0)),
        compiler_params=pltpu.CompilerParams(
            dimension_semantics=("parallel",),
            vmem_limit_bytes=int(vmem_limit)),
    )(alpha.astype(jnp.float32), bias.astype(jnp.float32), x2)

    return out2.reshape(orig_shape)


if __name__ == "__main__":
    key = jax.random.PRNGKey(0)
    batch, seq, hidden = 2, 8, 32
    x = jax.random.normal(key, (batch, seq, hidden), dtype=jnp.float32)

    # nn.Parameter(torch.ones(1)) / torch.zeros(1)
    alpha = jnp.ones((1,), jnp.float32)
    bias = jnp.zeros((1,), jnp.float32)

    out = layer_normalization(x, alpha, bias, eps=1e-5, affine=True)
    out = jax.block_until_ready(out)

    # Reference in plain JAX (same semantics: unbiased std, eps added to std).
    mean = jnp.mean(x, axis=-1, keepdims=True)
    std = jnp.sqrt(jnp.sum((x - mean) ** 2, axis=-1, keepdims=True) / (hidden - 1))
    ref = alpha[0] * ((x - mean) / (std + 1e-5)) + bias[0]
    assert jnp.allclose(out, ref, atol=1e-3, rtol=1e-3), "mismatch vs reference"

    print("KERNEL_OK")
</pallas_src>

<mosaic_0001>
module attributes {stable_mosaic.version = 11 : i64} {
  func.func @_layernorm_kernel(%arg0: i32, %arg1: memref<1xf32, #tpu.memory_space<smem>>, %arg2: memref<1xf32, #tpu.memory_space<smem>>, %arg3: memref<16x32xf32, #tpu.memory_space<vmem>>, %arg4: memref<16x32xf32, #tpu.memory_space<vmem>>) attributes {dimension_semantics = [#tpu.dimension_semantics<parallel>], iteration_bounds = array<i64: 1>, scalar_prefetch = 0 : i64, scratch_operands = 0 : i64, tpu.core_type = #tpu.core_type<tc>, window_params = [{transform_indices = @transform_0, window_bounds = array<i64: 1>}, {transform_indices = @transform_1, window_bounds = array<i64: 1>}, {transform_indices = @transform_2, window_bounds = array<i64: 16, 32>}, {transform_indices = @transform_3, window_bounds = array<i64: 16, 32>}]} {
    %c0 = arith.constant 0 : index
    %c0_0 = arith.constant 0 : index
    %0 = vector.load %arg3[%c0, %c0_0] : memref<16x32xf32, #tpu.memory_space<vmem>>, vector<16x32xf32>
    %cst = arith.constant dense<0.000000e+00> : vector<16xf32>
    %1 = vector.multi_reduction <add>, %0, %cst [1] : vector<16x32xf32> to vector<16xf32>
    %2 = vector.shape_cast %1 : vector<16xf32> to vector<16x1xf32>
    %cst_1 = arith.constant 3.125000e-02 : f32
    %3 = vector.broadcast %cst_1 : f32 to vector<16x1xf32>
    %4 = arith.mulf %2, %3 : vector<16x1xf32>
    %5 = vector.broadcast %4 : vector<16x1xf32> to vector<16x32xf32>
    %6 = arith.subf %0, %5 : vector<16x32xf32>
    %7 = arith.mulf %6, %6 : vector<16x32xf32>
    %cst_2 = arith.constant dense<0.000000e+00> : vector<16xf32>
    %8 = vector.multi_reduction <add>, %7, %cst_2 [1] : vector<16x32xf32> to vector<16xf32>
    %9 = vector.shape_cast %8 : vector<16xf32> to vector<16x1xf32>
    %cst_3 = arith.constant 0.0322580636 : f32
    %10 = vector.broadcast %cst_3 : f32 to vector<16x1xf32>
    %11 = arith.mulf %9, %10 : vector<16x1xf32>
    %12 = math.sqrt %11 : vector<16x1xf32>
    %c0_4 = arith.constant 0 : index
    %13 = memref.load %arg1[%c0_4] : memref<1xf32, #tpu.memory_space<smem>>
    %cst_5 = arith.constant 9.99999974E-6 : f32
    %14 = vector.broadcast %cst_5 : f32 to vector<16x1xf32>
    %15 = arith.addf %12, %14 : vector<16x1xf32>
    %16 = vector.broadcast %13 : f32 to vector<16x1xf32>
    %17 = arith.divf %16, %15 : vector<16x1xf32>
    %18 = vector.broadcast %17 : vector<16x1xf32> to vector<16x32xf32>
    %19 = arith.mulf %6, %18 : vector<16x32xf32>
    %c0_6 = arith.constant 0 : index
    %20 = memref.load %arg2[%c0_6] : memref<1xf32, #tpu.memory_space<smem>>
    %21 = vector.broadcast %20 : f32 to vector<16x32xf32>
    %22 = arith.addf %19, %21 : vector<16x32xf32>
    %c0_7 = arith.constant 0 : index
    %c0_8 = arith.constant 0 : index
    %23 = vector.load %arg4[%c0_7, %c0_8] : memref<16x32xf32, #tpu.memory_space<vmem>>, vector<16x32xf32>
    tpu.vector_store %arg4[%c0_7, %c0_8], %22 {strides = array<i32>} : memref<16x32xf32, #tpu.memory_space<vmem>>, vector<16x32xf32>,
    return
  }
  func.func @transform_0(%arg0: i32) -> i32 {
    %c0_i32 = arith.constant 0 : i32
    %c0_i32_0 = arith.constant 0 : i32
    return %c0_i32 : i32
  }
  func.func @transform_1(%arg0: i32) -> i32 {
    %c0_i32 = arith.constant 0 : i32
    %c0_i32_0 = arith.constant 0 : i32
    return %c0_i32 : i32
  }
  func.func @transform_2(%arg0: i32) -> (i32, i32) {
    %c0_i32 = arith.constant 0 : i32
    %c0_i32_0 = arith.constant 0 : i32
    return %arg0, %c0_i32 : i32, i32
  }
  func.func @transform_3(%arg0: i32) -> (i32, i32) {
    %c0_i32 = arith.constant 0 : i32
    %c0_i32_0 = arith.constant 0 : i32
    return %arg0, %c0_i32 : i32, i32
  }
}

</mosaic_0001>

<bundles_post_ra>
// kernel: tpu_custom_call.1
= control target key start
LH: loop header
LB: loop body
LE: loop exit
PB: predicated region body
PF: predicated region fallthrough
CT: control target
= control target key end

     0   :  { %10 = vsyncpa [#allocation5], 0  ;;  %s227_s0 = inlined_call_operand.<no memory space> [shape: f32[1], index: 0, kind: input, shape index: {}]   ;;  %s228_s1 = inlined_call_operand.<no memory space> [shape: f32[1], index: 1, kind: input, shape index: {}]   ;;  %s229_s2 = inlined_call_operand.hbm [shape: f32[16,32], index: 2, kind: input, shape index: {}]   ;;  %s230_s3 = inlined_call_operand.hbm [shape: f32[16,32], index: 3, kind: output, shape index: {}]  }
   0x1   :  { %11 = vsyncpa [#allocation6], 0  ;;  %s161_s12 = smov [#allocation4]   ;;  %s113_s16 = scalar_lea.hbm %s229_s2, 256 }
   0x2   :  { %s21_s13 = sshll.u32 %s161_s12, 4  ;;  %p114_p0 = scmp.ne.s32.totalorder %s229_s2, %s113_s16  ;;  %s22_s13 = int_to_ptr.vmem [resolvable:$true] %s21_s13 }
   0x3   :  { %p117_p1 = scmp.lt.u32.totalorder %s113_s16, %s229_s2 }
   0x5   :  { %p119_p2 = pnand %p117_p1, %p114_p0 }
   0x7   :  { %122 = shalt.err (!%p119_p2)
}
   0x8   :  { %s123_s21 = scalar_lea.vmem %s22_s13, 256  ;;  %p128_p4 = scmp.lt.s32.totalorder %s22_s13, %s22_s13 }
   0x9   :  { %p124_p3 = scmp.ne.s32.totalorder %s22_s13, %s123_s21  ;;  %p129_p5 = scmp.lt.s32.totalorder %s123_s21, %s123_s21 }
   0xb   :  { %p130_p6 = por %p129_p5, %p128_p4 }
   0xd   :  { %p131_p7 = pnand %p130_p6, %p124_p3 }
   0xf   :  { %134 = shalt.err (!%p131_p7)
}
  0x10   :  { %s162_s22 = smov 128   ;;  %s163_s23 = smov 8  }
  0x11   :  { %27 = dma.hbm_to_vmem [thread:$0]  %s229_s2, 256, %s22_s13, [#allocation5], %s162_s22, %s162_s22, %s163_s23  }
  0x12   :  { %157 = dma.done.wait [#allocation5], 256  }
  0x13   :  { %158 = vsyncadd [#allocation5], 4294967040  ;;  %vm33_vm0 = vcmask 261120   ;;  %v31_v0 = vld [vmem:[#allocation4] sm:$0xff]  ;;  %v32_v1 = vld [vmem:[#allocation4 + $0x8] sm:$0xff]  ;;  %v71_v30 = vstv %s227_s0  ;;  %v79_v33 = vstv %s228_s1  ;;  %s164_s29 = smov [#allocation7]  }
  0x14   :  { %v34_v2 = vsel %vm33_vm0, %v31_v0, 0.0  ;;  %v37_v3 = vsel %vm33_vm0, %v32_v1, 0.0  ;;  %s89_s30 = sshll.u32 %s164_s29, 4  ;;  %s90_s30 = int_to_ptr.vmem [resolvable:$true] %s89_s30 }
  0x15   :  { %35 = vadd.xlane.f32.xlu0 %v34_v2  ;;  %s135_s0 = scalar_lea.vmem %s90_s30, 256  ;;  %p140_p9 = scmp.lt.s32.totalorder %s90_s30, %s90_s30 }
  0x16   :  { %p136_p8 = scmp.ne.s32.totalorder %s90_s30, %s135_s0  ;;  %p141_p10 = scmp.lt.s32.totalorder %s135_s0, %s135_s0 }
  0x18   :  { %p142_p11 = por %p141_p10, %p140_p9 }
  0x19   :  { %38 = vadd.xlane.f32.xlu0 %v37_v3 }
  0x1a   :  { %p143_p12 = pnand %p142_p11, %p136_p8 }
  0xa2   :  { %v36_v4 = vpop.xlane.xlu0 %35 }
  0xa3   :  { %v40_v5 = vmul.f32 0.03125, %v36_v4 }
  0xa5   :  { %v42_v6 = vsub.f32 %v31_v0, %v40_v5 }
  0xa6   :  { %v39_v7 = vpop.xlane.xlu0 %38 }
  0xa7   :  { %v41_v8 = vmul.f32 0.03125, %v39_v7  ;;  %v44_v9 = vmul.f32 %v42_v6, %v42_v6 }
  0xa9   :  { %v43_v10 = vsub.f32 %v32_v1, %v41_v8  ;;  %v46_v11 = vsel %vm33_vm0, %v44_v9, 0.0 }
  0xaa   :  { %47 = vadd.xlane.f32.xlu1 %v46_v11 }
  0xab   :  { %v45_v12 = vmul.f32 %v43_v10, %v43_v10 }
  0xad   :  { %v49_v13 = vsel %vm33_vm0, %v45_v12, 0.0 }
  0xae   :  { %50 = vadd.xlane.f32.xlu1 %v49_v13 }
 0x137   :  { %v48_v14 = vpop.xlane.xlu1 %47 }
 0x138   :  { %v52_v15 = vmul.f32 0.032258064, %v48_v14 }
 0x13a   :  { %105 = vrsqrt.f32 %v52_v15  ;;  %vm56_vm1 = vcmp.eq.f32.partialorder %v52_v15, inf  ;;  %v59_v20 = vand.u32 2147483648, %v52_v15  ;;  %vm58_vm2 = vcmp.eq.f32.partialorder %v52_v15, 0.0 }
 0x13b   :  { %v51_v16 = vpop.xlane.xlu1 %50 }
 0x13c   :  { %v53_v17 = vmul.f32 0.032258064, %v51_v16 }
 0x13e   :  { %107 = vrsqrt.f32 %v53_v17  ;;  %vm63_vm3 = vcmp.eq.f32.partialorder %v53_v17, inf  ;;  %v66_v26 = vand.u32 2147483648, %v53_v17  ;;  %vm65_vm4 = vcmp.eq.f32.partialorder %v53_v17, 0.0 }
 0x144   :  { %v106_v18 = vpop.eup %105 }
 0x145   :  { %v55_v19 = vmul.f32 %v106_v18, %v52_v15 }
 0x147   :  { %v57_v21 = vsel %vm56_vm1, %v52_v15, %v55_v19 }
 0x148   :  { %v108_v22 = vpop.eup %107  ;;  %v60_v23 = vsel %vm58_vm2, %v59_v20, %v57_v21 }
 0x149   :  { %v69_v24 = vadd.f32 1e-05, %v60_v23  ;;  %v62_v25 = vmul.f32 %v108_v22, %v53_v17 }
 0x14b   :  { %109 = vrcp.f32 %v69_v24  ;;  %v64_v27 = vsel %vm63_vm3, %v53_v17, %v62_v25 }
 0x14c   :  { %v67_v28 = vsel %vm65_vm4, %v66_v26, %v64_v27 }
 0x14d   :  { %v70_v29 = vadd.f32 1e-05, %v67_v28 }
 0x14f   :  { %111 = vrcp.f32 %v70_v29 }
 0x155   :  { %v110_v31 = vpop.eup %109 }
 0x156   :  { %v73_v32 = vmul.f32 %v110_v31, %v71_v30 }
 0x158   :  { %v76_v34 = vmul.f32 %v73_v32, %v42_v6 }
 0x159   :  { %v112_v35 = vpop.eup %111 }
 0x15a   :  { %v75_v36 = vmul.f32 %v112_v35, %v71_v30  ;;  %v80_v37 = vadd.f32 %v79_v33, %v76_v34 }
 0x15c   :  { %v77_v38 = vmul.f32 %v75_v36, %v43_v10  ;;  %82 = vst.msk [vmem:[#allocation7] sm:$0xff] %vm33_vm0, %v80_v37 }
 0x15e   :  { %v81_v39 = vadd.f32 %v79_v33, %v77_v38 }
 0x160   :  { %83 = vst.msk [vmem:[#allocation7 + $0x8] sm:$0xff] %vm33_vm0, %v81_v39 }
 0x161   :  { %146 = shalt.err (!%p143_p12)
}
 0x162   :  { %s147_s5 = scalar_lea.hbm %s230_s3, 256 }
 0x163   :  { %p148_p13 = scmp.ne.s32.totalorder %s230_s3, %s147_s5  ;;  %p151_p0 = scmp.lt.u32.totalorder %s147_s5, %s230_s3 }
 0x165   :  { %p153_p1 = pnand %p151_p0, %p148_p13 }
 0x167   :  { %156 = shalt.err (!%p153_p1)
}
 0x168   :  { %95 = dma.vmem_to_hbm [thread:$0]  %s90_s30, 256, %s230_s3, [#allocation6], %s162_s22, %s162_s22, %s163_s23  }
 0x169   :  { %159 = dma.done.wait [#allocation6], 256  }
 0x16a   :  { %160 = vsyncadd [#allocation6], 4294967040 }
 0x16b   :  { %99 = vsyncpa [#allocation5], 1 }
 0x16c   :  { %100 = vsyncpa [#allocation6], 1 }

</bundles_post_ra>
